<compile_context>
chip_gen: v6e
topology: v6e:2x2x1
jax: 0.10.0
libtpu: 0.0.40
codegen_flags: <defaults>
</compile_context>

<pallas_src>
import math

import jax
import jax.numpy as jnp
from jax.experimental import pallas as pl
from jax.experimental.pallas import tpu as pltpu

EPS = 1e-5  # matches nn.BatchNorm2d default


# ------------------------------ Pallas kernel -------------------------------

def _transition_kernel(x_ref, s_ref, b_ref, w_ref, c_ref, o_ref):
    # x_ref: (th, 2, W2, 2*Cin) bf16 -- row r holds one output row's 2x2
    #        windows: dim 1 is the vertical pair, lane dim packs (left,right)xCin.
    # s_ref, b_ref: (1, 2*Cin) f32 folded-BN scale / shift (tiled over the pair).
    # w_ref: (2*Cin, Cout) bf16 = 0.25 * [W ; W]  (horizontal pool + avg folded in)
    # c_ref: (1, Cout) f32 conv bias.
    # o_ref: (th*W2, Cout) bf16 -- flat output pixels, lane-dense store.
    x = x_ref[...].astype(jnp.float32)
    t = jnp.maximum(x * s_ref[...] + b_ref[...], 0.0)          # BN + ReLU (f32 VPU)
    rows = t[:, 0] + t[:, 1]                                   # vertical pair sum -> (th, W2, 2*Cin)
    th, w2, k = rows.shape
    lhs = rows.reshape(th * w2, k).astype(jnp.bfloat16)        # f32 merge, then downcast for MXU
    y = jnp.dot(lhs, w_ref[...], preferred_element_type=jnp.float32)   # pool + 1x1 conv
    o_ref[...] = (y + c_ref[...]).astype(o_ref.dtype)


# -------------------------------- tiling -------------------------------------

def _pick_tile(m2, w2, cin2, cout):
    """Row tile `th` and scoped-VMEM limit, sized from the local chip's VMEM."""
    try:
        vmem_cap = int(pltpu.get_tpu_info().vmem_capacity_bytes)
    except Exception:
        vmem_cap = 64 * 1024 * 1024                    # v7x-safe fallback

    in_row = 2 * w2 * cin2 * 2                         # bf16 input bytes per output row
    out_row = w2 * cout * 2                            # bf16 output bytes per output row
    weight_bytes = cin2 * cout * 2 + (2 * cin2 + cout) * 4

    budget = int(vmem_cap * 0.4)                       # double-buffered in + out tiles
    th = max(1, (budget - weight_bytes) // (2 * (in_row + out_row)))
    # keep >= 4 grid steps so the single "parallel" axis feeds both v7x TensorCores
    th = min(th, max(1, pl.cdiv(m2, min(4, m2))))
    # keep th*W2 a multiple of 8 so the flat (th*W2, Cout) output block is legal
    align = 8 // math.gcd(w2, 8)
    if th >= m2:
        th = m2                                        # single full-extent block (exempt)
    else:
        th = min(max(align, (th // align) * align), m2)

    vmem_limit = min(int(vmem_cap * 0.75), 96 * 1024 * 1024)
    return th, vmem_limit


# -------------------------------- wrapper ------------------------------------

def transition_forward(x_nchw, params, *, out_dtype=None):
    N, Cin, H, W = x_nchw.shape
    assert H % 2 == 0 and W % 2 == 0, "avg_pool2d(2) path assumes even H, W"
    H2, W2 = H // 2, W // 2
    Cout = params["w"].shape[1]
    M2 = N * H2
    if out_dtype is None:
        out_dtype = x_nchw.dtype

    # NCHW -> NHWC once, with the bf16 downcast fused into the same XLA pass;
    # the 4-D pairing view below is a pure (free) reshape of the NHWC array.
    x = jnp.transpose(x_nchw, (0, 2, 3, 1)).astype(jnp.bfloat16)
    x4 = x.reshape(M2, 2, W2, 2 * Cin)

    # Fold eval-mode BN into per-channel scale/shift (tiny, kept f32).
    s = (params["gamma"] / jnp.sqrt(params["var"] + EPS)).astype(jnp.float32)
    b = (params["beta"] - params["mean"] * s).astype(jnp.float32)
    s2 = jnp.tile(s, 2).reshape(1, 2 * Cin)
    b2 = jnp.tile(b, 2).reshape(1, 2 * Cin)

    # Fold horizontal pair-sum + 1/4 avg factor into the weight:
    #   0.25*(x_l + x_r) @ W  ==  [x_l ; x_r] @ (0.25*[W ; W])
    wcat = (0.25 * jnp.concatenate([params["w"], params["w"]], axis=0)).astype(jnp.bfloat16)
    c = params["c"].reshape(1, Cout).astype(jnp.float32)

    th, vmem_limit = _pick_tile(M2, W2, 2 * Cin, Cout)

    out_flat = pl.pallas_call(
        _transition_kernel,
        out_shape=jax.ShapeDtypeStruct((M2 * W2, Cout), jnp.bfloat16),
        grid=(pl.cdiv(M2, th),),
        in_specs=[
            pl.BlockSpec((th, 2, W2, 2 * Cin), lambda i: (i, 0, 0, 0)),
            pl.BlockSpec((1, 2 * Cin), lambda i: (0, 0)),
            pl.BlockSpec((1, 2 * Cin), lambda i: (0, 0)),
            pl.BlockSpec((2 * Cin, Cout), lambda i: (0, 0)),
            pl.BlockSpec((1, Cout), lambda i: (0, 0)),
        ],
        out_specs=pl.BlockSpec((th * W2, Cout), lambda i: (i, 0)),
        compiler_params=pltpu.CompilerParams(
            dimension_semantics=("parallel",),
            vmem_limit_bytes=vmem_limit,
        ),
    )(x4, s2, b2, wcat, c)

    # Flat (M2*W2, Cout) -> NHWC (free view) -> NCHW; upcast fused into this pass.
    out = out_flat.reshape(N, H2, W2, Cout)
    return jnp.transpose(out, (0, 3, 1, 2)).astype(out_dtype)


# --------------------------- params / reference ------------------------------

def init_transition_params(key, input_size, output_size):
    ks = jax.random.split(key, 6)
    return dict(
        gamma=1.0 + 0.1 * jax.random.normal(ks[0], (input_size,), jnp.float32),
        beta=0.1 * jax.random.normal(ks[1], (input_size,), jnp.float32),
        mean=0.1 * jax.random.normal(ks[2], (input_size,), jnp.float32),
        var=0.5 + jax.random.uniform(ks[3], (input_size,), jnp.float32),
        w=0.1 * jax.random.normal(ks[4], (input_size, output_size), jnp.float32),
        c=0.05 * jax.random.normal(ks[5], (output_size,), jnp.float32),
    )


def transition_reference(x_nchw, params):
    # Pure-JAX f32 reference, PyTorch op order: bn -> relu -> 1x1 conv -> avg_pool2d(2).
    x = jnp.transpose(x_nchw, (0, 2, 3, 1)).astype(jnp.float32)
    s = params["gamma"] / jnp.sqrt(params["var"] + EPS)
    t = jnp.maximum(x * s + (params["beta"] - params["mean"] * s), 0.0)
    y = jnp.einsum("nhwc,co->nhwo", t, params["w"],
                   precision=jax.lax.Precision.HIGHEST) + params["c"]
    N, H, W, Co = y.shape
    y = y.reshape(N, H // 2, 2, W // 2, 2, Co).mean(axis=(2, 4))
    return jnp.transpose(y, (0, 3, 1, 2))


if __name__ == "__main__":
    key = jax.random.PRNGKey(0)
    kx, kp = jax.random.split(key)

    N, Cin, H, W = 2, 8, 16, 16
    Cout = 16
    # NOTE: perf claims only hold at realistic widths (Cin, Cout >= 128); at these
    # toy shapes every vreg lane dim is mostly padding.

    x = jax.random.normal(kx, (N, Cin, H, W), jnp.float32)
    params = init_transition_params(kp, Cin, Cout)

    out = transition_forward(x, params)
    out = jax.block_until_ready(out)
    assert out.shape == (N, Cout, H // 2, W // 2), out.shape

    ref = transition_reference(x, params)
    max_err = float(jnp.max(jnp.abs(out - ref)))
    # bf16 activation / weight / output streaming -> loosened parity tolerance.
    if max_err > 5e-2:
        raise AssertionError(f"Pallas output mismatch vs reference: max abs err {max_err}")

    print("KERNEL_OK")
</pallas_src>

<mosaic_0001>
module attributes {stable_mosaic.version = 11 : i64} {
  func.func @_transition_kernel(%arg0: i32, %arg1: memref<4x2x8x16xbf16, #tpu.memory_space<vmem>>, %arg2: memref<1x16xf32, #tpu.memory_space<vmem>>, %arg3: memref<1x16xf32, #tpu.memory_space<vmem>>, %arg4: memref<16x16xbf16, #tpu.memory_space<vmem>>, %arg5: memref<1x16xf32, #tpu.memory_space<vmem>>, %arg6: memref<32x16xbf16, #tpu.memory_space<vmem>>) attributes {dimension_semantics = [#tpu.dimension_semantics<parallel>], iteration_bounds = array<i64: 4>, scalar_prefetch = 0 : i64, scratch_operands = 0 : i64, tpu.core_type = #tpu.core_type<tc>, window_params = [{transform_indices = @transform_0, window_bounds = array<i64: 4, 2, 8, 16>}, {pipeline_mode = #tpu.pipeline_mode<synchronous>, transform_indices = @transform_1, window_bounds = array<i64: 1, 16>}, {pipeline_mode = #tpu.pipeline_mode<synchronous>, transform_indices = @transform_2, window_bounds = array<i64: 1, 16>}, {pipeline_mode = #tpu.pipeline_mode<synchronous>, transform_indices = @transform_3, window_bounds = array<i64: 16, 16>}, {pipeline_mode = #tpu.pipeline_mode<synchronous>, transform_indices = @transform_4, window_bounds = array<i64: 1, 16>}, {transform_indices = @transform_5, window_bounds = array<i64: 32, 16>}]} {
    %c0 = arith.constant 0 : index
    %c0_0 = arith.constant 0 : index
    %c0_1 = arith.constant 0 : index
    %c0_2 = arith.constant 0 : index
    %0 = vector.load %arg1[%c0, %c0_0, %c0_1, %c0_2] : memref<4x2x8x16xbf16, #tpu.memory_space<vmem>>, vector<4x2x8x16xbf16>
    %1 = arith.extf %0 : vector<4x2x8x16xbf16> to vector<4x2x8x16xf32>
    %c0_3 = arith.constant 0 : index
    %c0_4 = arith.constant 0 : index
    %2 = vector.load %arg2[%c0_3, %c0_4] : memref<1x16xf32, #tpu.memory_space<vmem>>, vector<1x16xf32>
    %3 = vector.shape_cast %2 : vector<1x16xf32> to vector<1x1x1x16xf32>
    %4 = vector.broadcast %3 : vector<1x1x1x16xf32> to vector<4x2x8x16xf32>
    %5 = arith.mulf %1, %4 : vector<4x2x8x16xf32>
    %c0_5 = arith.constant 0 : index
    %c0_6 = arith.constant 0 : index
    %6 = vector.load %arg3[%c0_5, %c0_6] : memref<1x16xf32, #tpu.memory_space<vmem>>, vector<1x16xf32>
    %7 = vector.shape_cast %6 : vector<1x16xf32> to vector<1x1x1x16xf32>
    %8 = vector.broadcast %7 : vector<1x1x1x16xf32> to vector<4x2x8x16xf32>
    %9 = arith.addf %5, %8 : vector<4x2x8x16xf32>
    %cst = arith.constant 0.000000e+00 : f32
    %10 = vector.broadcast %cst : f32 to vector<4x2x8x16xf32>
    %11 = arith.maximumf %9, %10 : vector<4x2x8x16xf32>
    %12 = vector.extract_strided_slice %11 {offsets = [0, 0, 0, 0], sizes = [4, 1, 8, 16], strides = [1, 1, 1, 1]} : vector<4x2x8x16xf32> to vector<4x1x8x16xf32>
    %13 = vector.shape_cast %12 : vector<4x1x8x16xf32> to vector<4x8x16xf32>
    %14 = vector.extract_strided_slice %11 {offsets = [0, 1, 0, 0], sizes = [4, 1, 8, 16], strides = [1, 1, 1, 1]} : vector<4x2x8x16xf32> to vector<4x1x8x16xf32>
    %15 = vector.shape_cast %14 : vector<4x1x8x16xf32> to vector<4x8x16xf32>
    %16 = arith.addf %13, %15 : vector<4x8x16xf32>
    %17 = vector.shape_cast %16 : vector<4x8x16xf32> to vector<32x16xf32>
    %18 = arith.truncf %17 : vector<32x16xf32> to vector<32x16xbf16>
    %c0_7 = arith.constant 0 : index
    %c0_8 = arith.constant 0 : index
    %19 = vector.load %arg4[%c0_7, %c0_8] : memref<16x16xbf16, #tpu.memory_space<vmem>>, vector<16x16xbf16>
    %cst_9 = arith.constant dense<0.000000e+00> : vector<32x16xf32>
    %20 = tpu.matmul %18, %19, %cst_9 {dimension_numbers = #tpu.dot_dimension_numbers<[1], [0], [0], [1], [0, 0, 1, 1], [], []>} : vector<32x16xbf16>, vector<16x16xbf16>, vector<32x16xf32> -> vector<32x16xf32>
    %c0_10 = arith.constant 0 : index
    %c0_11 = arith.constant 0 : index
    %21 = vector.load %arg5[%c0_10, %c0_11] : memref<1x16xf32, #tpu.memory_space<vmem>>, vector<1x16xf32>
    %22 = vector.broadcast %21 : vector<1x16xf32> to vector<32x16xf32>
    %23 = arith.addf %20, %22 : vector<32x16xf32>
    %24 = arith.truncf %23 : vector<32x16xf32> to vector<32x16xbf16>
    %c0_12 = arith.constant 0 : index
    %c0_13 = arith.constant 0 : index
    %25 = vector.load %arg6[%c0_12, %c0_13] : memref<32x16xbf16, #tpu.memory_space<vmem>>, vector<32x16xbf16>
    tpu.vector_store %arg6[%c0_12, %c0_13], %24 {strides = array<i32>} : memref<32x16xbf16, #tpu.memory_space<vmem>>, vector<32x16xbf16>,
    return
  }
  func.func @transform_0(%arg0: i32) -> (i32, i32, i32, i32) {
    %c0_i32 = arith.constant 0 : i32
    %c0_i32_0 = arith.constant 0 : i32
    %c0_i32_1 = arith.constant 0 : i32
    %c0_i32_2 = arith.constant 0 : i32
    return %arg0, %c0_i32, %c0_i32_0, %c0_i32_1 : i32, i32, i32, i32
  }
  func.func @transform_1(%arg0: i32) -> (i32, i32) {
    %c0_i32 = arith.constant 0 : i32
    %c0_i32_0 = arith.constant 0 : i32
    %c0_i32_1 = arith.constant 0 : i32
    return %c0_i32, %c0_i32_0 : i32, i32
  }
  func.func @transform_2(%arg0: i32) -> (i32, i32) {
    %c0_i32 = arith.constant 0 : i32
    %c0_i32_0 = arith.constant 0 : i32
    %c0_i32_1 = arith.constant 0 : i32
    return %c0_i32, %c0_i32_0 : i32, i32
  }
  func.func @transform_3(%arg0: i32) -> (i32, i32) {
    %c0_i32 = arith.constant 0 : i32
    %c0_i32_0 = arith.constant 0 : i32
    %c0_i32_1 = arith.constant 0 : i32
    return %c0_i32, %c0_i32_0 : i32, i32
  }
  func.func @transform_4(%arg0: i32) -> (i32, i32) {
    %c0_i32 = arith.constant 0 : i32
    %c0_i32_0 = arith.constant 0 : i32
    %c0_i32_1 = arith.constant 0 : i32
    return %c0_i32, %c0_i32_0 : i32, i32
  }
  func.func @transform_5(%arg0: i32) -> (i32, i32) {
    %c0_i32 = arith.constant 0 : i32
    %c0_i32_0 = arith.constant 0 : i32
    return %arg0, %c0_i32 : i32, i32
  }
}

</mosaic_0001>

<bundles_post_ra>
// kernel: tpu_custom_call.1
= control target key start
LH: loop header
LB: loop body
LE: loop exit
PB: predicated region body
PF: predicated region fallthrough
CT: control target
= control target key end

     0   :  { %10 = vsyncpa [#allocation3], 0  ;;  %s878_s0 = inlined_call_operand.hbm [shape: bf16[16,2,8,16], index: 0, kind: input, shape index: {}]   ;;  %s879_s1 = inlined_call_operand.vmem [shape: f32[1,16], index: 1, kind: input, shape index: {}]   ;;  %s880_s2 = inlined_call_operand.vmem [shape: f32[1,16], index: 2, kind: input, shape index: {}]   ;;  %s881_s3 = inlined_call_operand.hbm [shape: bf16[16,16], index: 3, kind: input, shape index: {}]   ;;  %s882_s4 = inlined_call_operand.vmem [shape: f32[1,16], index: 4, kind: input, shape index: {}]   ;;  %s883_s5 = inlined_call_operand.vmem [shape: bf16[128,16], index: 5, kind: output, shape index: {}]  }
   0x1   :  { %12 = vsyncpa [#allocation3 + $0x1], 0 }
   0x2   :  { %13 = vsyncpa [#allocation5], 0  ;;  %s734_s18 = smov 0   ;;  %s736_s19 = smov 0  }
   0x3   :  { %s738_s20 = smov 0   ;;  %s740_s21 = smov 0  }
   0x4 LB: > { %s493_s22 = sadd.s32 4294967295, %s698_s21   ;;  %p39_p0 = scmp.ne.s32.totalorder %s690_s19, %s686_s18  ;;  %s698_s21 = sphi %s740_s21, %s899_s21   ;;  %s694_s20 = sphi %s738_s20, %s898_s20   ;;  %s690_s19 = sphi %s736_s19, %s897_s19   ;;  %s686_s18 = sphi %s734_s18, %s896_s18  }
   0x5   : > { %p756_p1 = scmp.eq.s32.totalorder %s493_s22, 0  ;;  %p495_p2 = scmp.ge.s32.totalorder %s698_s21, 1 }
   0x6   : > { %p160_p3 = scmp.lt.s32.totalorder %s698_s21, 5  ;;  %s700_s26 = smov [#allocation4]  }
   0x7   : > { %s888_s23 = scalar_select %p756_p1, 1, 0 }
   0x8   : > { %p764_p4 = por %p756_p1, %p39_p0  ;;  %p768_p5 = pnand %p495_p2, %p160_p3 }
   0x9   : > { %s178_s27 = sshll.u32 %s700_s26, 4  ;;  %s781_s29 = sadd.s32 1, %s698_s21   ;;  %s179_s27 = int_to_ptr.vmem [resolvable:$true] %s178_s27 }
   0xa   : > { %s889_s24 = scalar_select %p764_p4, 1, 0 }
   0xb   : > { %s890_s25 = scalar_select %p768_p5, 1, 0 }
   0xc   : > { %p559_p6 = pneg %p768_p5  ;;  %s26_s30 = sadd.s32 1, %s694_s20 }
   0xd   : > { %s23_s6 = ssub.s32 %s698_s21, %s781_s29  ;;  %s617_s7 = scalar_lea.vmem %s179_s27, 128 }
   0xe   : > { %p776_p7 = pnand %p559_p6, %p756_p1  ;;  %p618_p9 = scmp.ne.s32.totalorder %s179_s27, %s617_s7 }
   0xf   : > { %p625_p12 = scmp.lt.s32.totalorder %s179_s27, %s179_s27  ;;  %p626_p13 = scmp.lt.s32.totalorder %s617_s7, %s617_s7 }
  0x10   : > { %p608_p8 = pneg %p776_p7 }
  0x11   : > { %p627_p0 = por %p626_p13, %p625_p12 }
  0x12   : > { %p620_p10 = pnand %p618_p9, %p608_p8 }
  0x14   : > { %p621_p11 = pneg %p620_p10 }
  0x16   : > { %p628_p2 = pnand %p627_p0, %p621_p11 }
  0x18   : > { %631 = shalt.err (!%p628_p2)
}
  0x19   : > { %s701_s8 = smov 64   ;;  %s702_s9 = smov 4  }
  0x1a   : > { %562 = dma.hbm_to_vmem [thread:$0]  (!%p776_p7), %s881_s3, 128, %s179_s27, [#allocation5], %s701_s8, %s701_s8, %s702_s9  }
  0x1b   : > { %p24_p3 = scmp.eq.s32.totalorder %s23_s6, 0  ;;  %p33_p6 = scmp.ne.s32.totalorder %s694_s20, %s690_s19 }
  0x1c   : > { %p34_p8 = scmp.eq.s32.totalorder %s698_s21, 0  ;;  %p568_p9 = scmp.lt.s32.totalorder %s698_s21, 4 }
  0x1d   : > { %s801_s12 = scalar_select %p24_p3, %s694_s20, %s26_s30  }
  0x1e   : > { %p35_p10 = por %p34_p8, %p33_p6  ;;  %s195_s13 = sand.u32 1, %s694_s20  }
  0x1f   : > { %s498_s14 = sshll.u32 %s195_s13, 5  ;;  %s520_s15 = sshll.u32 %s698_s21, 9 }
  0x20   : > { %s808_s18 = scalar_lea.hbm %s878_s0, %s520_s15  ;;  %s199_s26 = scalar_lea.vmem [#allocation2], %s498_s14 }
  0x21   : > { %s207_s27 = sshll.u32 %s199_s26, 4  ;;  %p812_p7 = pnand %p568_p9, %p35_p10  ;;  %s810_s27 = int_to_ptr.vmem [resolvable:$true] %s207_s27 }
  0x22   : > { %s816_s30 = scalar_lea.sflag [#allocation3], %s195_s13  ;;  %s632_s6 = scalar_lea.hbm %s808_s18, 512 }
  0x23   : > { %p633_p11 = scmp.ne.s32.totalorder %s808_s18, %s632_s6  ;;  %p634_p12 = pneg %p812_p7 }
  0x24   : > { %s637_s11 = scalar_lea.hbm %s878_s0, 2048  ;;  %p638_p2 = scmp.lt.s32.totalorder %s808_s18, %s878_s0 }
  0x25   : > { %p635_p13 = pnand %p634_p12, %p633_p11  ;;  %p639_p3 = scmp.lt.s32.totalorder %s637_s11, %s632_s6 }
  0x27   : > { %p636_p0 = pneg %p635_p13  ;;  %p640_p6 = por %p639_p3, %p638_p2 }
  0x29   : > { %p641_p8 = pnand %p640_p6, %p636_p0 }
  0x2b   : > { %644 = shalt.err (!%p641_p8)
}
  0x2c   : > { %s645_s13 = scalar_lea.vmem %s810_s27, 512  ;;  %s703_s16 = smov [#allocation2]  }
  0x2d   : > { %p646_p9 = scmp.ne.s32.totalorder %s810_s27, %s645_s13  ;;  %s650_s17 = sshll.u32 %s703_s16, 4  ;;  %s651_s17 = int_to_ptr.vmem [resolvable:$false] %s650_s17 }
  0x2e   : > { %s652_s26 = scalar_lea.vmem %s651_s17, 1024  ;;  %p653_p13 = scmp.lt.s32.totalorder %s810_s27, %s651_s17 }
  0x2f   : > { %p648_p10 = pnand %p646_p9, %p634_p12  ;;  %p654_p1 = scmp.lt.s32.totalorder %s652_s26, %s645_s13 }
  0x31   : > { %p649_p11 = pneg %p648_p10  ;;  %p655_p4 = por %p654_p1, %p653_p13 }
  0x33   : > { %p656_p5 = pnand %p655_p4, %p649_p11 }
  0x35   : > { %659 = shalt.err (!%p656_p5)
}
  0x36   : > { %566 = dma.hbm_to_vmem [thread:$0]  (!%p812_p7), %s808_s18, 512, %s810_s27, %s816_s30, %s701_s8, %s701_s8, %s702_s9  }
  0x37   : > { %p893_p12 = scmp.ne.s32.totalorder %s890_s25, 0 }
  0x38   : > { %s221_s6 = sand.u32 (!%p893_p12), 1, %s690_s19   ;;  %p894_p1 = scmp.ne.s32.totalorder (!%p893_p12), %s889_s24, 0 }
  0x39   : > { %219 = sbr.rel (%p893_p12) target bundleno = 285 (0x11d), region = 40  ;;  %s503_s7 = sshll.u32 (!%p893_p12), %s221_s6, 5 }
  0x3a   : > { %s222_s10 = scalar_lea.sflag (!%p893_p12), [#allocation3], %s221_s6  ;;  %s225_s11 = scalar_lea.vmem (!%p893_p12), [#allocation2], %s503_s7 }
  0x3e   : > { %677 = dma.done.wait (%p894_p1), %s222_s10, 512  }
  0x3f   : > { %679 = vsyncadd (%p894_p1), %s222_s10, 4294966784  ;;  %p895_p4 = scmp.ne.s32.totalorder %s888_s23, 0 }
  0x41   : > { %681 = dma.done.wait (%p895_p4), [#allocation5], 128  }
  0x42   : > { %683 = vsyncadd (%p895_p4), [#allocation5], 4294967168  ;;  %v605_v0 = vld [vmem:[#allocation4] sm:$0xff]   ;;  %v541_v2 = vld [vmem:[%s225_s11 + $0x8] sm:$0xff]   ;;  %vm339_vm0 = vcmask 130048   ;;  %s505_s23 = sshll.u32 %s493_s22, 2 }
  0x43   : > { %v526_v1 = vld [vmem:[%s225_s11] sm:$0xff]   ;;  %547 = vmatprep.subr.bf16.mxu0 %v605_v0  ;;  %v531_v6 = vunpack.c.l.bf16 %v541_v2  ;;  %v532_v7 = vunpack.c.h.bf16 %v541_v2  ;;  %v542_v8 = vld [vmem:[%s225_s11 + $0x10] sm:$0xff]   ;;  %v543_v9 = vld [vmem:[%s225_s11 + $0x18] sm:$0xff]   ;;  %p258_p5 = scmp.lt.s32.totalorder %s505_s23, 15  ;;  %vm411_vm1 = vcmask 125952  }
  0x44   : > { %v507_v3 = vld [vmem:[%s879_s1] ss:$0 sm:$0xff]  ;;  %v527_v4 = vunpack.c.l.bf16 %v526_v1  ;;  %v528_v5 = vunpack.c.h.bf16 %v526_v1  ;;  %548 = vmatpush3.bf16.msra.mxu0 %v605_v0  ;;  %v535_v11 = vunpack.c.l.bf16 %v542_v8  ;;  %v536_v12 = vunpack.c.h.bf16 %v542_v8 }
  0x45   : > { %v508_v10 = vld [vmem:[%s880_s2] ss:$0 sm:$0xff]  ;;  %v539_v13 = vunpack.c.l.bf16 %v543_v9  ;;  %v540_v14 = vunpack.c.h.bf16 %v543_v9  ;;  %v289_v17 = vmul.f32 %v531_v6, %v507_v3  ;;  %v290_v18 = vmul.f32 %v532_v7, %v507_v3  ;;  %s901_s23 = smov (!%p258_p5, %s505_s23), 15 }
  0x46   : > { %v287_v15 = vmul.f32 %v527_v4, %v507_v3  ;;  %v288_v16 = vmul.f32 %v528_v5, %v507_v3  ;;  %v291_v19 = vmul.f32 %v535_v11, %v507_v3  ;;  %v292_v20 = vmul.f32 %v536_v12, %v507_v3  ;;  %v509_v45 = vld [vmem:[%s882_s4] ss:$0 sm:$0xff]  ;;  %s506_s28 = sshll.u32 %s901_s23, 2 }
  0x47   : > { %v293_v21 = vmul.f32 %v539_v13, %v507_v3  ;;  %v294_v22 = vmul.f32 %v540_v14, %v507_v3  ;;  %v304_v25 = vadd.f32 %v508_v10, %v289_v17  ;;  %v305_v26 = vadd.f32 %v508_v10, %v290_v18  ;;  %s261_s15 = scalar_lea.vmem %s883_s5, %s506_s28 }
  0x48   : > { %v302_v23 = vadd.f32 %v508_v10, %v287_v15  ;;  %v303_v24 = vadd.f32 %v508_v10, %v288_v16  ;;  %v306_v27 = vadd.f32 %v508_v10, %v291_v19  ;;  %v307_v28 = vadd.f32 %v508_v10, %v292_v20 }
  0x49   : > { %v308_v29 = vadd.f32 %v508_v10, %v293_v21  ;;  %v309_v30 = vadd.f32 %v508_v10, %v294_v22  ;;  %v312_v33 = vmax.f32 %v304_v25, 0.0  ;;  %v313_v34 = vmax.f32 %v305_v26, 0.0 }
  0x4a   : > { %v310_v31 = vmax.f32 %v302_v23, 0.0  ;;  %v311_v32 = vmax.f32 %v303_v24, 0.0  ;;  %v314_v35 = vmax.f32 %v306_v27, 0.0  ;;  %v315_v36 = vmax.f32 %v307_v28, 0.0 }
  0x4b   : > { %v316_v37 = vmax.f32 %v308_v29, 0.0  ;;  %v317_v38 = vmax.f32 %v309_v30, 0.0  ;;  %v319_v40 = vadd.f32 %v313_v34, %v312_v33 }
  0x4c   : > { %v318_v39 = vadd.f32 %v311_v32, %v310_v31  ;;  %v320_v41 = vadd.f32 %v315_v36, %v314_v35 }
  0x4d   : > { %v321_v42 = vadd.f32 %v317_v38, %v316_v37 }
  0x4e   : > { %v322_v43 = vpack.c.bf16 %v319_v40, %v318_v39 }
  0x4f   : > { %v323_v44 = vpack.c.bf16 %v321_v42, %v320_v41 }
  0x50   : > { %549 = vmatprep.mubr.msk.bf16.mxu0 %vm339_vm0, %v322_v43 }
  0x51   : > { %550 = vmatmul.mubr.msk.bf16.vlgmr.msra.gmra.mxu0 %vm339_vm0, %v323_v44 }
 0x111   : > { %v551_v46 = vpop.f32.mrf.mxu0 }
 0x112   : > { %v389_v47 = vadd.f32 %v551_v46, %v509_v45 }
 0x113   : > { %v380_v48 = vpop.f32.mrf.mxu0 }
 0x114   : > { %v523_v49 = vpack.c.bf16 %v389_v47, %v389_v47  ;;  %v381_v50 = vadd.f32 %v509_v45, %v380_v48 }
 0x115   : > { %v552_v51 = vpop.f32.mrf.mxu0 }
 0x116   : > { %414 = vst.msk [vmem:[%s261_s15 + $0x8] sm:$0xf] %vm411_vm1, %v523_v49  ;;  %v521_v52 = vpack.c.bf16 %v381_v50, %v381_v50  ;;  %v392_v53 = vadd.f32 %v552_v51, %v509_v45 }
 0x117   : > { %v383_v54 = vpop.f32.mrf.mxu0 }
 0x118   : > { %412 = vst.msk [vmem:[%s261_s15] sm:$0xf] %vm411_vm1, %v521_v52  ;;  %v524_v55 = vpack.c.bf16 %v392_v53, %v392_v53  ;;  %v384_v56 = vadd.f32 %v509_v45, %v383_v54 }
 0x11a   : > { %415 = vst.msk [vmem:[%s261_s15 + $0xc] sm:$0xf] %vm411_vm1, %v524_v55  ;;  %v522_v57 = vpack.c.bf16 %v384_v56, %v384_v56 }
 0x11c   : > { %413 = vst.msk [vmem:[%s261_s15 + $0x4] sm:$0xf] %vm411_vm1, %v522_v57 }
 0x11d PF: > { %p16_p7 = scmp.ge.s32.totalorder %s781_s29, 6   ;;  %s896_s18 = smov %s690_s19 }
 0x11e   : > { %s897_s19 = smov %s694_s20  ;;  %s898_s20 = smov %s801_s12 }
 0x11f   : > { %s899_s21 = smov %s781_s29  ;;  %18 = sbr.rel (!%p16_p7) target bundleno = 4 (0x4), region = 84 }
 0x124   :  { %438 = vsyncpa [#allocation3], 1 }
 0x125   :  { %440 = vsyncpa [#allocation3 + $0x1], 1 }
 0x126   :  { %441 = vsyncpa [#allocation5], 1 }

</bundles_post_ra>
